<compile_context>
chip_gen: v6e
topology: v6e:2x2x1
jax: 0.10.0
libtpu: 0.0.40
codegen_flags: <defaults>
</compile_context>

<pallas_src>
import jax
import jax.numpy as jnp
from jax.experimental import pallas as pl
from jax.experimental.pallas import tpu as pltpu

LANES = 128  # vreg lane width


def _min_sublanes(dtype) -> int:
    # Minimum legal second-to-last tile dim: (8,128) f32, (16,128) bf16, (32,128) int8.
    return 8 * (4 // jnp.dtype(dtype).itemsize)


def linear_kernel(w_ref, b_ref, x_ref, o_ref):
    # w_ref: SMEM (1, 1) — nn.Linear weight (out_features, in_features) = (1, 1)
    # b_ref: SMEM (1,)   — nn.Linear bias   (out_features,)             = (1,)
    # x_ref/o_ref: VMEM (TM, 128) lane-dense tiles.
    # With in_features = out_features = 1, x @ W^T + b is an elementwise
    # scale-and-shift -> one VPU multiply-add per vreg, hidden under the DMA pipeline.
    o_ref[...] = x_ref[...] * w_ref[0, 0] + b_ref[0]


def _pallas_scale_shift(x2: jax.Array, weight: jax.Array, bias: jax.Array, tm: int) -> jax.Array:
    """Scale-and-shift a lane-dense (M, 128) slab, tiled over rows."""
    m, lanes = x2.shape
    assert lanes == LANES
    sub = _min_sublanes(x2.dtype)

    # Row-tile: multiple of the minimal sublane count, at least one minimal
    # tile, never bigger than the slab.
    tm = max(sub, (min(tm, m) // sub) * sub)

    # Keep >= 2 row blocks whenever the slab allows it, so the "parallel" axis
    # can be sharded across both v7x TensorCores.
    if m >= 2 * sub:
        half = ((pl.cdiv(m, 2) + sub - 1) // sub) * sub
        tm = min(tm, half)

    grid = (pl.cdiv(m, tm),)  # ragged last block handled by Pallas (masked writes)

    return pl.pallas_call(
        linear_kernel,
        out_shape=jax.ShapeDtypeStruct((m, LANES), x2.dtype),
        grid=grid,
        in_specs=[
            pl.BlockSpec(memory_space=pltpu.MemorySpace.SMEM),   # weight (scalar)
            pl.BlockSpec(memory_space=pltpu.MemorySpace.SMEM),   # bias   (scalar)
            pl.BlockSpec((tm, LANES), lambda i: (i, 0)),         # x tile in VMEM
        ],
        out_specs=pl.BlockSpec((tm, LANES), lambda i: (i, 0)),
        compiler_params=pltpu.CompilerParams(
            dimension_semantics=("parallel",),
        ),
    )(weight, bias, x2)


def linear_regression_v2(
    x: jax.Array,
    weight: jax.Array,
    bias: jax.Array,
    *,
    tm: int = 4096,
    force_pallas: bool = False,
) -> jax.Array:
    """Forward pass of LinearRegressionModelV2: nn.Linear(1, 1)."""
    n, f = x.shape
    assert f == 1 and weight.shape == (1, 1) and bias.shape == (1,)
    x_flat = x.reshape(n)
    w = weight[0, 0]
    b = bias[0]

    if n < 128 * 1024 and not force_pallas:
        # Small/medium batch: a fused XLA elementwise op is strictly cheaper
        # than a pallas_call launch until HBM streaming dominates.
        return (x_flat * w + b).reshape(n, 1)

    sub = _min_sublanes(x.dtype)
    tile_elems = sub * LANES
    n_aligned = (n // tile_elems) * tile_elems

    if n_aligned == n:
        # Fully aligned: zero-copy reshape to a lane-dense slab, no pad/slice.
        out = _pallas_scale_shift(x_flat.reshape(n // LANES, LANES), weight, bias, tm)
        return out.reshape(n, 1)

    if n_aligned == 0:
        # Tiny forced path: pad a single minimal tile and slice back.
        x2 = jnp.pad(x_flat, (0, tile_elems - n)).reshape(sub, LANES)
        out = _pallas_scale_shift(x2, weight, bias, tm)
        return out.reshape(tile_elems)[:n].reshape(n, 1)

    # Misaligned: Pallas on the aligned prefix, plain jnp on the (< tile) tail.
    head = _pallas_scale_shift(
        x_flat[:n_aligned].reshape(n_aligned // LANES, LANES), weight, bias, tm
    )
    tail = x_flat[n_aligned:] * w + b
    return jnp.concatenate([head.reshape(n_aligned), tail]).reshape(n, 1)


if __name__ == "__main__":
    key = jax.random.PRNGKey(0)
    kx, kw, kb, kx2, kx3, kx4 = jax.random.split(key, 6)

    # Deterministic parameter init (mimics nn.Linear's U(-1/sqrt(fan_in), 1/sqrt(fan_in)), fan_in=1).
    weight = jax.random.uniform(kw, (1, 1), dtype=jnp.float32, minval=-1.0, maxval=1.0)
    bias = jax.random.uniform(kb, (1,), dtype=jnp.float32, minval=-1.0, maxval=1.0)

    # Tiny input consistent with the module: (batch=8, in_features=1) -> padded single-tile path.
    x = jax.random.normal(kx, (8, 1), dtype=jnp.float32)
    out = jax.block_until_ready(linear_regression_v2(x, weight, bias, force_pallas=True))
    ref = x @ weight.T + bias
    assert out.shape == (8, 1)
    assert jnp.allclose(out, ref, atol=1e-6, rtol=1e-6)

    # Misaligned batch -> aligned-prefix Pallas (multi-block grid) + jnp tail.
    x2 = jax.random.normal(kx2, (3000, 1), dtype=jnp.float32)
    out2 = jax.block_until_ready(linear_regression_v2(x2, weight, bias, tm=8, force_pallas=True))
    ref2 = x2 @ weight.T + bias
    assert out2.shape == (3000, 1)
    assert jnp.allclose(out2, ref2, atol=1e-6, rtol=1e-6)

    # Fully aligned batch -> zero-copy reshape path, 2 row blocks (megacore-friendly).
    x3 = jax.random.normal(kx3, (4096, 1), dtype=jnp.float32)
    out3 = jax.block_until_ready(linear_regression_v2(x3, weight, bias, force_pallas=True))
    ref3 = x3 @ weight.T + bias
    assert out3.shape == (4096, 1)
    assert jnp.allclose(out3, ref3, atol=1e-6, rtol=1e-6)

    # Aligned batch whose row count is not a tile multiple -> ragged last grid block.
    x4 = jax.random.normal(kx4, (3072, 1), dtype=jnp.float32)
    out4 = jax.block_until_ready(linear_regression_v2(x4, weight, bias, tm=16, force_pallas=True))
    ref4 = x4 @ weight.T + bias
    assert out4.shape == (3072, 1)
    assert jnp.allclose(out4, ref4, atol=1e-6, rtol=1e-6)

    print("KERNEL_OK")
</pallas_src>

<mosaic_0001>
module attributes {stable_mosaic.version = 11 : i64} {
  func.func @linear_kernel(%arg0: i32, %arg1: memref<1x1xf32, #tpu.memory_space<smem>>, %arg2: memref<1xf32, #tpu.memory_space<smem>>, %arg3: memref<8x128xf32, #tpu.memory_space<vmem>>, %arg4: memref<8x128xf32, #tpu.memory_space<vmem>>) attributes {dimension_semantics = [#tpu.dimension_semantics<parallel>], iteration_bounds = array<i64: 1>, scalar_prefetch = 0 : i64, scratch_operands = 0 : i64, tpu.core_type = #tpu.core_type<tc>, window_params = [{transform_indices = @transform_0, window_bounds = array<i64: 1, 1>}, {transform_indices = @transform_1, window_bounds = array<i64: 1>}, {transform_indices = @transform_2, window_bounds = array<i64: 8, 128>}, {transform_indices = @transform_3, window_bounds = array<i64: 8, 128>}]} {
    %c0 = arith.constant 0 : index
    %c0_0 = arith.constant 0 : index
    %0 = vector.load %arg3[%c0, %c0_0] : memref<8x128xf32, #tpu.memory_space<vmem>>, vector<8x128xf32>
    %c0_1 = arith.constant 0 : index
    %c0_2 = arith.constant 0 : index
    %1 = memref.load %arg1[%c0_1, %c0_2] : memref<1x1xf32, #tpu.memory_space<smem>>
    %2 = vector.broadcast %1 : f32 to vector<8x128xf32>
    %3 = arith.mulf %0, %2 : vector<8x128xf32>
    %c0_3 = arith.constant 0 : index
    %4 = memref.load %arg2[%c0_3] : memref<1xf32, #tpu.memory_space<smem>>
    %5 = vector.broadcast %4 : f32 to vector<8x128xf32>
    %6 = arith.addf %3, %5 : vector<8x128xf32>
    %c0_4 = arith.constant 0 : index
    %c0_5 = arith.constant 0 : index
    %7 = vector.load %arg4[%c0_4, %c0_5] : memref<8x128xf32, #tpu.memory_space<vmem>>, vector<8x128xf32>
    tpu.vector_store %arg4[%c0_4, %c0_5], %6 {strides = array<i32>} : memref<8x128xf32, #tpu.memory_space<vmem>>, vector<8x128xf32>,
    return
  }
  func.func @transform_0(%arg0: i32) -> (i32, i32) {
    %c0_i32 = arith.constant 0 : i32
    %c0_i32_0 = arith.constant 0 : i32
    %c0_i32_1 = arith.constant 0 : i32
    return %c0_i32, %c0_i32_0 : i32, i32
  }
  func.func @transform_1(%arg0: i32) -> i32 {
    %c0_i32 = arith.constant 0 : i32
    %c0_i32_0 = arith.constant 0 : i32
    return %c0_i32 : i32
  }
  func.func @transform_2(%arg0: i32) -> (i32, i32) {
    %c0_i32 = arith.constant 0 : i32
    %c0_i32_0 = arith.constant 0 : i32
    return %arg0, %c0_i32 : i32, i32
  }
  func.func @transform_3(%arg0: i32) -> (i32, i32) {
    %c0_i32 = arith.constant 0 : i32
    %c0_i32_0 = arith.constant 0 : i32
    return %arg0, %c0_i32 : i32, i32
  }
}

</mosaic_0001>

<bundles_post_ra>
// kernel: tpu_custom_call.1
= control target key start
LH: loop header
LB: loop body
LE: loop exit
PB: predicated region body
PF: predicated region fallthrough
CT: control target
= control target key end

     0   :  { %10 = vsyncpa [#allocation5], 0  ;;  %s132_s0 = inlined_call_operand.<no memory space> [shape: f32[1,1], index: 0, kind: input, shape index: {}]   ;;  %s133_s1 = inlined_call_operand.<no memory space> [shape: f32[1], index: 1, kind: input, shape index: {}]   ;;  %s134_s2 = inlined_call_operand.hbm [shape: f32[8,128], index: 2, kind: input, shape index: {}]   ;;  %s135_s3 = inlined_call_operand.hbm [shape: f32[8,128], index: 3, kind: output, shape index: {}]  }
   0x1   :  { %11 = vsyncpa [#allocation6], 0  ;;  %s98_s12 = smov [#allocation4]  }
   0x2   :  { %s22_s13 = sshll.u32 %s98_s12, 4  ;;  %s23_s13 = int_to_ptr.vmem [resolvable:$true] %s22_s13 }
   0x3   :  { %s62_s14 = scalar_lea.vmem %s23_s13, 128  ;;  %p67_p1 = scmp.lt.s32.totalorder %s23_s13, %s23_s13 }
   0x4   :  { %p63_p0 = scmp.ne.s32.totalorder %s23_s13, %s62_s14  ;;  %p68_p2 = scmp.lt.s32.totalorder %s62_s14, %s62_s14 }
   0x6   :  { %p69_p3 = por %p68_p2, %p67_p1 }
   0x8   :  { %p70_p4 = pnand %p69_p3, %p63_p0 }
   0xa   :  { %73 = shalt.err (!%p70_p4)
}
   0xb   :  { %25 = dma.hbm_to_vmem [thread:$0]  %s134_s2, 128, %s23_s13, [#allocation5]  }
   0xc   :  { %94 = dma.done.wait [#allocation5], 128  }
   0xd   :  { %95 = vsyncadd [#allocation5], 4294967168  ;;  %v31_v0 = vstv %s132_s0  ;;  %v29_v1 = vld [vmem:[#allocation4] sm:$0xff]  ;;  %v34_v2 = vstv %s133_s1  ;;  %s99_s21 = smov [#allocation7]  }
   0xe   :  { %s43_s22 = sshll.u32 %s99_s21, 4  ;;  %v32_v3 = vmul.f32 %v31_v0, %v29_v1  ;;  %s44_s22 = int_to_ptr.vmem [resolvable:$true] %s43_s22 }
   0xf   :  { %s74_s23 = scalar_lea.vmem %s44_s22, 128  ;;  %p79_p6 = scmp.lt.s32.totalorder %s44_s22, %s44_s22 }
  0x10   :  { %v35_v4 = vadd.f32 %v34_v2, %v32_v3  ;;  %p75_p5 = scmp.ne.s32.totalorder %s44_s22, %s74_s23  ;;  %p80_p7 = scmp.lt.s32.totalorder %s74_s23, %s74_s23 }
  0x12   :  { %36 = vst [vmem:[#allocation7] sm:$0xff] %v35_v4  ;;  %p81_p8 = por %p80_p7, %p79_p6 }
  0x14   :  { %p82_p9 = pnand %p81_p8, %p75_p5 }
  0x16   :  { %85 = shalt.err (!%p82_p9)
}
  0x17   :  { %46 = dma.vmem_to_hbm [thread:$0]  %s44_s22, 128, %s135_s3, [#allocation6]  }
  0x18   :  { %96 = dma.done.wait [#allocation6], 128  }
  0x19   :  { %97 = vsyncadd [#allocation6], 4294967168 }
  0x1a   :  { %50 = vsyncpa [#allocation5], 1 }
  0x1b   :  { %51 = vsyncpa [#allocation6], 1 }

</bundles_post_ra>
